<compile_context>
chip_gen: v5e
topology: v5e:2x2
jax: 0.10.0
libtpu: 0.0.40
codegen_flags: <defaults>
</compile_context>

<pallas_src>
import jax
import jax.numpy as jnp
from jax.experimental import pallas as pl
from jax.experimental.pallas import tpu as pltpu


def linear_kernel(x_ref, w_ref, b_ref, o_ref):
    # x_ref: VMEM (2, TILE_B)   w_ref: SMEM (2,)   b_ref: SMEM (1,)   o_ref: VMEM (1, TILE_B)
    w0 = w_ref[0]          # scalar f32 from SMEM (scalar path, free)
    w1 = w_ref[1]
    b = b_ref[0]
    x0 = x_ref[0:1, :]     # (1, TILE_B) static slices -> stay lane-dense, VPU-only
    x1 = x_ref[1:2, :]
    o_ref[...] = w0 * x0 + w1 * x1 + b


def linear_regression_forward(x, w, b, *, tile_b=2048):
    """x: (B, 2) f32, w: (1, 2) f32 (PyTorch nn.Linear weight), b: (1,) f32."""
    B, K = x.shape
    assert K == 2, "LinearRegressionModel expects in_features == 2"

    # Transpose so batch sits on the lane axis and pad batch to a lane-dense tile
    # (tile is a multiple of 128; padded tail is computed but sliced off below).
    n_blocks = pl.cdiv(B, tile_b)
    Bp = n_blocks * tile_b
    xt = x.T.astype(jnp.float32)                    # (2, B)
    if Bp != B:
        xt = jnp.pad(xt, ((0, 0), (0, Bp - B)))     # (2, Bp)

    w_s = w.reshape(-1).astype(jnp.float32)         # (2,)  -> SMEM
    b_s = b.reshape(-1).astype(jnp.float32)         # (1,)  -> SMEM

    out = pl.pallas_call(
        linear_kernel,
        out_shape=jax.ShapeDtypeStruct((1, Bp), jnp.float32),
        grid=(n_blocks,),
        in_specs=[
            # Lane-dense batch tiles of x; sublane dim (2) is full-extent so legal.
            pl.BlockSpec((K, tile_b), lambda i: (0, i)),
            # Weights / bias ride the scalar path in SMEM (no VMEM tile, no DMA per step).
            pl.BlockSpec(memory_space=pltpu.MemorySpace.SMEM),
            pl.BlockSpec(memory_space=pltpu.MemorySpace.SMEM),
        ],
        out_specs=pl.BlockSpec((1, tile_b), lambda i: (0, i)),
        compiler_params=pltpu.CompilerParams(
            # Batch axis is independent -> shard across both TensorCores on v7x.
            dimension_semantics=("parallel",),
            # Explicit VMEM budget: safe on v7x (64 MiB phys); per-step footprint is
            # only ~tens of KiB even with double buffering.
            vmem_limit_bytes=32 * 1024 * 1024,
        ),
    )(xt, w_s, b_s)

    return out[0, :B].reshape(B, 1)


if __name__ == "__main__":
    key = jax.random.PRNGKey(0)
    kx, kw, kb = jax.random.split(key, 3)

    in_features, out_features = 2, 1

    # Parameters (same shapes/convention as nn.Linear(2, 1)).
    w = jax.random.normal(kw, (out_features, in_features), dtype=jnp.float32)
    b = jax.random.normal(kb, (out_features,), dtype=jnp.float32)

    # Case 1: toy batch (launch-overhead dominated; padded to one lane tile).
    batch = 8
    x = jax.random.normal(kx, (batch, in_features), dtype=jnp.float32)
    y = jax.block_until_ready(linear_regression_forward(x, w, b))
    y_ref = x @ w.T + b
    assert y.shape == (batch, out_features)
    assert jnp.allclose(y, y_ref, atol=1e-5), (y, y_ref)

    # Case 2: batch not a multiple of the tile -> exercises multi-step grid + padding.
    batch2 = 200
    x2 = jax.random.normal(kx, (batch2, in_features), dtype=jnp.float32)
    y2 = jax.block_until_ready(linear_regression_forward(x2, w, b, tile_b=128))
    y2_ref = x2 @ w.T + b
    assert y2.shape == (batch2, out_features)
    assert jnp.allclose(y2, y2_ref, atol=1e-5)

    print("KERNEL_OK")
</pallas_src>

<mosaic_0001>
module attributes {stable_mosaic.version = 11 : i64} {
  func.func @linear_kernel(%arg0: i32, %arg1: memref<2x2048xf32, #tpu.memory_space<vmem>>, %arg2: memref<2xf32, #tpu.memory_space<smem>>, %arg3: memref<1xf32, #tpu.memory_space<smem>>, %arg4: memref<1x2048xf32, #tpu.memory_space<vmem>>) attributes {dimension_semantics = [#tpu.dimension_semantics<parallel>], iteration_bounds = array<i64: 1>, scalar_prefetch = 0 : i64, scratch_operands = 0 : i64, tpu.core_type = #tpu.core_type<tc>, window_params = [{transform_indices = @transform_0, window_bounds = array<i64: 2, 2048>}, {transform_indices = @transform_1, window_bounds = array<i64: 2>}, {transform_indices = @transform_2, window_bounds = array<i64: 1>}, {transform_indices = @transform_3, window_bounds = array<i64: 1, 2048>}]} {
    %c0 = arith.constant 0 : index
    %0 = memref.load %arg2[%c0] : memref<2xf32, #tpu.memory_space<smem>>
    %c1 = arith.constant 1 : index
    %1 = memref.load %arg2[%c1] : memref<2xf32, #tpu.memory_space<smem>>
    %c0_0 = arith.constant 0 : index
    %2 = memref.load %arg3[%c0_0] : memref<1xf32, #tpu.memory_space<smem>>
    %c0_1 = arith.constant 0 : index
    %c0_2 = arith.constant 0 : index
    %3 = vector.load %arg1[%c0_1, %c0_2] : memref<2x2048xf32, #tpu.memory_space<vmem>>, vector<1x2048xf32>
    %c1_3 = arith.constant 1 : index
    %c0_4 = arith.constant 0 : index
    %4 = vector.load %arg1[%c1_3, %c0_4] : memref<2x2048xf32, #tpu.memory_space<vmem>>, vector<1x2048xf32>
    %5 = vector.broadcast %0 : f32 to vector<1x2048xf32>
    %6 = arith.mulf %5, %3 : vector<1x2048xf32>
    %7 = vector.broadcast %1 : f32 to vector<1x2048xf32>
    %8 = arith.mulf %7, %4 : vector<1x2048xf32>
    %9 = arith.addf %6, %8 : vector<1x2048xf32>
    %10 = vector.broadcast %2 : f32 to vector<1x2048xf32>
    %11 = arith.addf %9, %10 : vector<1x2048xf32>
    %c0_5 = arith.constant 0 : index
    %c0_6 = arith.constant 0 : index
    %12 = vector.load %arg4[%c0_5, %c0_6] : memref<1x2048xf32, #tpu.memory_space<vmem>>, vector<1x2048xf32>
    tpu.vector_store %arg4[%c0_5, %c0_6], %11 {strides = array<i32>} : memref<1x2048xf32, #tpu.memory_space<vmem>>, vector<1x2048xf32>,
    return
  }
  func.func @transform_0(%arg0: i32) -> (i32, i32) {
    %c0_i32 = arith.constant 0 : i32
    %c0_i32_0 = arith.constant 0 : i32
    return %c0_i32, %arg0 : i32, i32
  }
  func.func @transform_1(%arg0: i32) -> i32 {
    %c0_i32 = arith.constant 0 : i32
    %c0_i32_0 = arith.constant 0 : i32
    return %c0_i32 : i32
  }
  func.func @transform_2(%arg0: i32) -> i32 {
    %c0_i32 = arith.constant 0 : i32
    %c0_i32_0 = arith.constant 0 : i32
    return %c0_i32 : i32
  }
  func.func @transform_3(%arg0: i32) -> (i32, i32) {
    %c0_i32 = arith.constant 0 : i32
    %c0_i32_0 = arith.constant 0 : i32
    return %c0_i32, %arg0 : i32, i32
  }
}

</mosaic_0001>

<bundles_post_ra>
// kernel: tpu_custom_call.1
= control target key start
LH: loop header
LB: loop body
LE: loop exit
PB: predicated region body
PF: predicated region fallthrough
CT: control target
= control target key end

     0   :  { %9 = vsyncpa [#allocation4], 0  ;;  %s189_s0 = inlined_call_operand.hbm [shape: f32[2,2048], index: 0, kind: input, shape index: {}]   ;;  %s190_s1 = inlined_call_operand.vmem [shape: f32[2], index: 1, kind: input, shape index: {}]   ;;  %s191_s2 = inlined_call_operand.<no memory space> [shape: f32[1], index: 2, kind: input, shape index: {}]   ;;  %s192_s3 = inlined_call_operand.hbm [shape: f32[1,2048], index: 3, kind: output, shape index: {}]  }
   0x1   :  { %10 = vsyncpa [#allocation6], 0 }
   0x2   :  { %11 = vsyncpa [#allocation5], 0  ;;  %s17_s14 = sshll.u32 %s189_s0, 4  ;;  %s154_s15 = smov [#allocation3]   ;;  %s18_s14 = int_to_ptr.hbm [resolvable:$true] %s17_s14 }
   0x3   :  { %s19_s16 = sshll.u32 %s154_s15, 4  ;;  %s28_s19 = sshll.u32 %s190_s1, 4  ;;  %s20_s16 = int_to_ptr.vmem [resolvable:$true] %s19_s16  ;;  %s29_s19 = int_to_ptr.vmem [resolvable:$true] %s28_s19 }
   0x4   :  { %22 = dma.hbm_to_vmem [thread:$0]  %s18_s14, 512, %s20_s16, [#allocation4]  }
   0x5   :  { %s155_s20 = smov [#allocation7]  }
   0x6   :  { %31 = dma.vmem_to_smem %s29_s19, 16, %s155_s20, [#allocation6]  }
   0x7   :  { %148 = dma.done.wait [#allocation4], 512  }
   0x8   :  { %149 = vsyncadd [#allocation4], 4294966784 }
   0x9   :  { %150 = dma.done.wait [#allocation6], 16  }
   0xa   :  { %151 = vsyncadd [#allocation6], 4294967280 }
   0xb   :  { %42 = sfence }
   0xc   :  { %s43_s21 = sld [smem:[#allocation7]]  ;;  %v46_v0 = vld [vmem:[#allocation3] ss:$2 sm:$0xff]  ;;  %v48_v1 = vld [vmem:[#allocation3 + $0x10] ss:$2 sm:$0xff]  ;;  %v61_v10 = vstv %s191_s2  ;;  %s156_s23 = smov [#allocation8]  }
   0xd   :  { %s84_s22 = sld [smem:[#allocation7 + $0x1]]  ;;  %v50_v2 = vld [vmem:[#allocation3 + $0x1] ss:$2 sm:$0xff]  ;;  %v52_v3 = vld [vmem:[#allocation3 + $0x11] ss:$2 sm:$0xff]  ;;  %s71_s24 = sshll.u32 %s156_s23, 4  ;;  %s72_s24 = int_to_ptr.vmem [resolvable:$true] %s71_s24 }
   0xe   :  { %s73_s27 = sshll.u32 %s192_s3, 4  ;;  %s74_s27 = int_to_ptr.hbm [resolvable:$true] %s73_s27 }
  0x12   :  { %v53_v4 = vstv %s43_s21 }
  0x13   :  { %v54_v5 = vmul.f32 %v53_v4, %v46_v0  ;;  %v56_v6 = vstv %s84_s22  ;;  %v55_v7 = vmul.f32 %v53_v4, %v48_v1 }
  0x14   :  { %v57_v8 = vmul.f32 %v56_v6, %v50_v2  ;;  %v58_v9 = vmul.f32 %v56_v6, %v52_v3 }
  0x16   :  { %v59_v11 = vadd.f32 %v57_v8, %v54_v5  ;;  %v60_v12 = vadd.f32 %v58_v9, %v55_v7 }
  0x18   :  { %v62_v13 = vadd.f32 %v61_v10, %v59_v11  ;;  %v63_v14 = vadd.f32 %v61_v10, %v60_v12 }
  0x1a   :  { %64 = vst [vmem:[#allocation8] sm:$0xff] %v62_v13 }
  0x1b   :  { %65 = vst [vmem:[#allocation8 + $0x8] sm:$0xff] %v63_v14 }
  0x1c   :  { %76 = dma.vmem_to_hbm [thread:$0]  %s72_s24, 256, %s74_s27, [#allocation5]  }
  0x1d   :  { %152 = dma.done.wait [#allocation5], 256  }
  0x1e   :  { %153 = vsyncadd [#allocation5], 4294967040 }
  0x1f   :  { %81 = vsyncpa [#allocation4], 1 }
  0x20   :  { %82 = vsyncpa [#allocation5], 1 }
  0x21   :  { %83 = vsyncpa [#allocation6], 1 }

</bundles_post_ra>
